<compile_context>
chip_gen: v5e
topology: v5e:2x2
jax: 0.10.0
libtpu: 0.0.40
codegen_flags: <defaults>
</compile_context>

<pallas_src>
import functools
import math

import jax
import jax.numpy as jnp
from jax.experimental import pallas as pl
from jax.experimental.pallas import tpu as pltpu


def _round_up(x, m):
    return (x + m - 1) // m * m


def _pick_row_tile(n_p):
    # Largest MXU/lane-aligned row block that still leaves >= 2 row blocks so
    # both TensorCores of a v7x megacore get work on the "parallel" axis.
    for t in (1024, 512, 256, 128):
        if n_p % t == 0 and n_p // t >= 2:
            return t
    return 128  # only reached for n_p == 128


def _pick_col_tile(n_p):
    # Reduction (adjacency-column) block: bigger tiles amortize the ~0.35 us
    # per-grid-step overhead of the mem-bound adj stream.
    for t in (512, 256, 128):
        if n_p % t == 0:
            return t
    return 128


def _vmem_cap_bytes():
    # Generation-aware VMEM capacity (128 MiB on v5e/v6e, 64 MiB per-TC v7x).
    try:
        cap = getattr(pltpu.get_tpu_info(), "vmem_capacity_bytes", None)
        if cap:
            return int(cap)
    except Exception:
        pass
    return 64 << 20  # conservative fallback (v7x per-core VMEM)


# ---------------------------------------------------------------------------
# Fused kernel: out[i] = sum_k adj[i, k] @ (x[k] @ W)   (+ bias at k == last)
# Grid: (N_p // tm, N_p // tk); k (reduction) is the innermost / "arbitrary"
# axis; the f32 output block is resident across k and accumulated in place.
# ---------------------------------------------------------------------------
def _gcn_kernel(adj_ref, x_ref, w_ref, b_ref, o_ref):
    k = pl.program_id(1)

    @pl.when(k == 0)
    def _init():
        o_ref[...] = jnp.zeros_like(o_ref)

    # Feature transform fused into the k-loop: (tk, F_in) @ (F_in, F_out_p),
    # bf16 MXU inputs, f32 accumulation.
    support = jnp.dot(x_ref[...], w_ref[...], preferred_element_type=jnp.float32)

    # Aggregation: bf16 adj tile @ bf16 support tile, accumulated directly
    # into the resident f32 output block (no extra VMEM scratch).
    o_ref[...] += jnp.dot(
        adj_ref[...],
        support.astype(jnp.bfloat16),
        preferred_element_type=jnp.float32,
    )

    @pl.when(k == pl.num_programs(1) - 1)
    def _finalize():
        o_ref[...] += b_ref[...]


@functools.partial(jax.jit, static_argnames=("tm", "tk"))
def graph_convolution(x, adj, weight, bias=None, *, tm=None, tk=None):
    N, f_in = x.shape
    f_out = weight.shape[1]
    assert adj.shape == (N, N)
    if bias is None:
        bias = jnp.zeros((f_out,), dtype=jnp.float32)

    # Lane-dense output / full MXU column utilization: pad F_out to 128.
    f_out_p = _round_up(f_out, 128)
    if f_out_p != f_out:
        weight = jnp.pad(weight, ((0, 0), (0, f_out_p - f_out)))
        bias = jnp.pad(bias, ((0, f_out_p - f_out),))

    # Pad N so arbitrary graph sizes tile cleanly (no tile=N fallback).
    # Padded adj rows/cols and x rows are exact zeros -> result is exact
    # after the final slice.
    n_p = _round_up(max(N, 128), 128)
    if tm is None:
        tm = _pick_row_tile(n_p)
    if tk is None:
        tk = _pick_col_tile(n_p)
    assert n_p % tm == 0 and n_p % tk == 0
    if n_p != N:
        adj = jnp.pad(adj, ((0, n_p - N), (0, n_p - N)))
        x = jnp.pad(x, ((0, n_p - N), (0, 0)))

    # bf16 streams for the HBM-bound inputs; accumulation stays f32.
    adj_b = adj.astype(jnp.bfloat16)
    x_b = x.astype(jnp.bfloat16)
    w_b = weight.astype(jnp.bfloat16)
    bias2d = bias.reshape(1, f_out_p).astype(jnp.float32)

    # Per-kernel VMEM budget (double-buffered inputs + resident f32 output),
    # capped at ~85% of this generation's physical VMEM.
    needed = (
        tm * tk * 2 * 2            # adj tile (bf16, double-buffered)
        + tk * f_in * 2 * 2        # x tile (bf16)
        + f_in * f_out_p * 2 * 2   # weight (bf16, constant index)
        + 8 * f_out_p * 4 * 2      # bias row (sublane-padded)
        + tm * f_out_p * 4 * 2     # output tile (f32, accumulated in place)
    )
    vmem_limit = int(min(int(0.85 * _vmem_cap_bytes()),
                         max(32 << 20, 2 * needed)))

    out_p = pl.pallas_call(
        _gcn_kernel,
        out_shape=jax.ShapeDtypeStruct((n_p, f_out_p), jnp.float32),
        grid_spec=pltpu.PrefetchScalarGridSpec(
            num_scalar_prefetch=0,
            grid=(n_p // tm, n_p // tk),
            in_specs=[
                pl.BlockSpec((tm, tk), lambda i, k: (i, k)),         # adj tile
                pl.BlockSpec((tk, f_in), lambda i, k: (k, 0)),       # x tile
                pl.BlockSpec((f_in, f_out_p), lambda i, k: (0, 0)),  # W (resident)
                pl.BlockSpec((1, f_out_p), lambda i, k: (0, 0)),     # bias row
            ],
            out_specs=pl.BlockSpec((tm, f_out_p), lambda i, k: (i, 0)),
        ),
        compiler_params=pltpu.CompilerParams(
            dimension_semantics=("parallel", "arbitrary"),
            vmem_limit_bytes=vmem_limit,
        ),
    )(adj_b, x_b, w_b, bias2d)

    # Slice off padding only when padding was actually applied (otherwise the
    # padded slab is returned as-is and downstream pays no extra HBM pass).
    if n_p != N or f_out_p != f_out:
        out_p = out_p[:N, :f_out]
    return out_p


if __name__ == "__main__":
    # Small deterministic setup consistent with the module's forward().
    # N intentionally NOT a multiple of 128 to exercise the padding path.
    N = 500
    in_features = 32
    out_features = 64

    key = jax.random.PRNGKey(0)
    kx, kadj, kw, kb = jax.random.split(key, 4)

    # Node features.
    x = jax.random.normal(kx, (N, in_features), dtype=jnp.float32)

    # Row-normalized random adjacency with self loops (dense stand-in for
    # torch.spmm's sparse adj).
    # TODO(synk): a true sparse (CSR/ELL) adjacency path has no clean dense-
    # BlockSpec equivalent; adj is streamed dense here.
    adj_raw = (jax.random.uniform(kadj, (N, N)) < 0.05).astype(jnp.float32)
    adj_raw = adj_raw + jnp.eye(N, dtype=jnp.float32)
    adj = adj_raw / jnp.sum(adj_raw, axis=1, keepdims=True)

    # Parameters initialized like reset_parameters(): U(-stdv, stdv).
    stdv = 1.0 / math.sqrt(out_features)
    weight = jax.random.uniform(
        kw, (in_features, out_features), minval=-stdv, maxval=stdv,
        dtype=jnp.float32)
    bias = jax.random.uniform(
        kb, (out_features,), minval=-stdv, maxval=stdv, dtype=jnp.float32)

    out = graph_convolution(x, adj, weight, bias)
    out = jax.block_until_ready(out)
    assert out.shape == (N, out_features)

    # Reference with the same bf16 rounding path as the kernel's MXU feeds.
    xw = jnp.dot(x.astype(jnp.bfloat16), weight.astype(jnp.bfloat16),
                 preferred_element_type=jnp.float32)
    ref_bf16 = jnp.dot(adj.astype(jnp.bfloat16), xw.astype(jnp.bfloat16),
                       preferred_element_type=jnp.float32) + bias[None, :]
    assert jnp.allclose(out, ref_bf16, atol=2e-3, rtol=2e-3), \
        "mismatch vs bf16-consistent reference"

    # Loose sanity check against full-f32 math (bf16 streams cost ~3 digits).
    ref_f32 = adj @ (x @ weight) + bias[None, :]
    assert jnp.allclose(out, ref_f32, atol=5e-2, rtol=5e-2), \
        "mismatch vs f32 reference"

    print("KERNEL_OK")
</pallas_src>

<mosaic_0001>
module attributes {stable_mosaic.version = 11 : i64} {
  func.func @_gcn_kernel(%arg0: i32, %arg1: i32, %arg2: memref<256x512xbf16, #tpu.memory_space<vmem>>, %arg3: memref<512x32xbf16, #tpu.memory_space<vmem>>, %arg4: memref<32x128xbf16, #tpu.memory_space<vmem>>, %arg5: memref<1x128xf32, #tpu.memory_space<vmem>>, %arg6: memref<256x128xf32, #tpu.memory_space<vmem>>) attributes {dimension_semantics = [#tpu.dimension_semantics<parallel>, #tpu.dimension_semantics<arbitrary>], iteration_bounds = array<i64: 2, 1>, scalar_prefetch = 0 : i64, scratch_operands = 0 : i64, tpu.core_type = #tpu.core_type<tc>, window_params = [{transform_indices = @transform_0, window_bounds = array<i64: 256, 512>}, {transform_indices = @transform_1, window_bounds = array<i64: 512, 32>}, {pipeline_mode = #tpu.pipeline_mode<synchronous>, transform_indices = @transform_2, window_bounds = array<i64: 32, 128>}, {pipeline_mode = #tpu.pipeline_mode<synchronous>, transform_indices = @transform_3, window_bounds = array<i64: 1, 128>}, {transform_indices = @transform_4, window_bounds = array<i64: 256, 128>}]} {
    %c0_i32 = arith.constant 0 : i32
    %0 = arith.cmpi eq, %arg1, %c0_i32 : i32
    %1 = arith.extui %0 : i1 to i32
    %c0_i32_0 = arith.constant 0 : i32
    %2 = arith.cmpi ne, %1, %c0_i32_0 : i32
    scf.if %2 {
      %cst_13 = arith.constant 0.000000e+00 : f32
      %15 = vector.broadcast %cst_13 : f32 to vector<256x128xf32>
      %c0_14 = arith.constant 0 : index
      %c0_15 = arith.constant 0 : index
      %16 = vector.load %arg6[%c0_14, %c0_15] : memref<256x128xf32, #tpu.memory_space<vmem>>, vector<256x128xf32>
      tpu.vector_store %arg6[%c0_14, %c0_15], %15 {strides = array<i32>} : memref<256x128xf32, #tpu.memory_space<vmem>>, vector<256x128xf32>,
    } else {
    }
    %c0 = arith.constant 0 : index
    %c0_1 = arith.constant 0 : index
    %3 = vector.load %arg3[%c0, %c0_1] : memref<512x32xbf16, #tpu.memory_space<vmem>>, vector<512x32xbf16>
    %c0_2 = arith.constant 0 : index
    %c0_3 = arith.constant 0 : index
    %4 = vector.load %arg4[%c0_2, %c0_3] : memref<32x128xbf16, #tpu.memory_space<vmem>>, vector<32x128xbf16>
    %cst = arith.constant dense<0.000000e+00> : vector<512x128xf32>
    %5 = tpu.matmul %3, %4, %cst {dimension_numbers = #tpu.dot_dimension_numbers<[1], [0], [0], [1], [0, 0, 1, 1], [], []>} : vector<512x32xbf16>, vector<32x128xbf16>, vector<512x128xf32> -> vector<512x128xf32>
    %c0_4 = arith.constant 0 : index
    %c0_5 = arith.constant 0 : index
    %6 = vector.load %arg6[%c0_4, %c0_5] : memref<256x128xf32, #tpu.memory_space<vmem>>, vector<256x128xf32>
    %c0_6 = arith.constant 0 : index
    %c0_7 = arith.constant 0 : index
    %7 = vector.load %arg2[%c0_6, %c0_7] : memref<256x512xbf16, #tpu.memory_space<vmem>>, vector<256x512xbf16>
    %8 = arith.truncf %5 : vector<512x128xf32> to vector<512x128xbf16>
    %cst_8 = arith.constant dense<0.000000e+00> : vector<256x128xf32>
    %9 = tpu.matmul %7, %8, %cst_8 {dimension_numbers = #tpu.dot_dimension_numbers<[1], [0], [0], [1], [0, 0, 1, 1], [], []>} : vector<256x512xbf16>, vector<512x128xbf16>, vector<256x128xf32> -> vector<256x128xf32>
    %10 = arith.addf %6, %9 : vector<256x128xf32>
    %c0_9 = arith.constant 0 : index
    %c0_10 = arith.constant 0 : index
    %11 = vector.load %arg6[%c0_9, %c0_10] : memref<256x128xf32, #tpu.memory_space<vmem>>, vector<256x128xf32>
    tpu.vector_store %arg6[%c0_9, %c0_10], %10 {strides = array<i32>} : memref<256x128xf32, #tpu.memory_space<vmem>>, vector<256x128xf32>,
    %c0_i32_11 = arith.constant 0 : i32
    %12 = arith.cmpi eq, %arg1, %c0_i32_11 : i32
    %13 = arith.extui %12 : i1 to i32
    %c0_i32_12 = arith.constant 0 : i32
    %14 = arith.cmpi ne, %13, %c0_i32_12 : i32
    scf.if %14 {
      %c0_13 = arith.constant 0 : index
      %c0_14 = arith.constant 0 : index
      %15 = vector.load %arg6[%c0_13, %c0_14] : memref<256x128xf32, #tpu.memory_space<vmem>>, vector<256x128xf32>
      %c0_15 = arith.constant 0 : index
      %c0_16 = arith.constant 0 : index
      %16 = vector.load %arg5[%c0_15, %c0_16] : memref<1x128xf32, #tpu.memory_space<vmem>>, vector<1x128xf32>
      %17 = vector.broadcast %16 : vector<1x128xf32> to vector<256x128xf32>
      %18 = arith.addf %15, %17 : vector<256x128xf32>
      %c0_17 = arith.constant 0 : index
      %c0_18 = arith.constant 0 : index
      %19 = vector.load %arg6[%c0_17, %c0_18] : memref<256x128xf32, #tpu.memory_space<vmem>>, vector<256x128xf32>
      tpu.vector_store %arg6[%c0_17, %c0_18], %18 {strides = array<i32>} : memref<256x128xf32, #tpu.memory_space<vmem>>, vector<256x128xf32>,
    } else {
    }
    return
  }
  func.func @transform_0(%arg0: i32, %arg1: i32) -> (i32, i32) {
    %c0_i32 = arith.constant 0 : i32
    return %arg0, %arg1 : i32, i32
  }
  func.func @transform_1(%arg0: i32, %arg1: i32) -> (i32, i32) {
    %c0_i32 = arith.constant 0 : i32
    %c0_i32_0 = arith.constant 0 : i32
    return %arg1, %c0_i32 : i32, i32
  }
  func.func @transform_2(%arg0: i32, %arg1: i32) -> (i32, i32) {
    %c0_i32 = arith.constant 0 : i32
    %c0_i32_0 = arith.constant 0 : i32
    %c0_i32_1 = arith.constant 0 : i32
    return %c0_i32, %c0_i32_0 : i32, i32
  }
  func.func @transform_3(%arg0: i32, %arg1: i32) -> (i32, i32) {
    %c0_i32 = arith.constant 0 : i32
    %c0_i32_0 = arith.constant 0 : i32
    %c0_i32_1 = arith.constant 0 : i32
    return %c0_i32, %c0_i32_0 : i32, i32
  }
  func.func @transform_4(%arg0: i32, %arg1: i32) -> (i32, i32) {
    %c0_i32 = arith.constant 0 : i32
    %c0_i32_0 = arith.constant 0 : i32
    return %arg0, %c0_i32 : i32, i32
  }
}

</mosaic_0001>

<bundles_post_ra>
// kernel: graph_convolution.1
= control target key start
LH: loop header
LB: loop body
LE: loop exit
PB: predicated region body
PF: predicated region fallthrough
CT: control target
= control target key end

     0   :  { %s2475_s15 = smov 0   ;;  %s2477_s16 = smov 0   ;;  %s3071_s0 = inlined_call_operand.vmem [shape: bf16[512,512], index: 0, kind: input, shape index: {}]   ;;  %s3072_s1 = inlined_call_operand.vmem [shape: bf16[512,32], index: 1, kind: input, shape index: {}]   ;;  %s3073_s2 = inlined_call_operand.vmem [shape: bf16[32,128], index: 2, kind: input, shape index: {}]   ;;  %s3074_s3 = inlined_call_operand.vmem [shape: f32[1,128], index: 3, kind: input, shape index: {}]   ;;  %s3075_s4 = inlined_call_operand.vmem [shape: f32[512,128], index: 4, kind: output, shape index: {}]  }
   0x1   :  { %s2479_s17 = smov 0  }
   0x2 LB: > { %s26_s18 = sadd.s32 1, %s2444_s16  ;;  %p1859_p0 = scmp.ge.s32.totalorder %s2448_s17, 1  ;;  %s2448_s17 = sphi %s2479_s17, %s14_s17   ;;  %s2444_s16 = sphi %s2477_s16, %s3077_s16   ;;  %s2440_s15 = sphi %s2475_s15, %s3076_s15  }
   0x3   : > { %p28_p1 = scmp.ge.s32.totalorder %s26_s18, 2  ;;  %p194_p2 = scmp.lt.s32.totalorder %s2448_s17, 3 }
   0x5   : > { %s3079_s18 = smov (%p28_p1, %s26_s18), 0  ;;  %p195_p3 = pnand %p1859_p0, %p194_p2 }
   0x6   : > { %s1860_s27 = sshll.u32 (!%p195_p3), %s2440_s15, 5 }
   0x7   : > { %198 = sbr.rel (%p195_p3) target bundleno = 942 (0x3ae), region = 36  ;;  %p232_p4 = scmp.lt.s32.totalorder (!%p195_p3), %s1860_s27, 63 }
   0xc   : > { %v2325_v0 = vld [vmem:[%s3073_s2 + $0x8] sm:$0xff]  ;;  %v2324_v1 = vld [vmem:[%s3073_s2] sm:$0xff]  ;;  %vm531_vm0 = vcmask 261120   ;;  %v2294_v4 = vld [vmem:[%s3072_s1 + $0x10] sm:$0xff]  ;;  %s3081_s27 = smov (!%p232_p4, %s1860_s27), 63 }
   0xd   : > { %634 = vmatpush.bf16.msra.mxu0 %v2325_v0  ;;  %2390 = vmatpush.bf16.msra.mxu3 %v2325_v0  ;;  %v2292_v2 = vld [vmem:[%s3072_s1] sm:$0xff]  ;;  %v2293_v3 = vld [vmem:[%s3072_s1 + $0x8] sm:$0xff]  ;;  %v2295_v5 = vld [vmem:[%s3072_s1 + $0x18] sm:$0xff]  ;;  %s2291_s28 = sshll.u32 %s3081_s27, 4  ;;  %s1864_s25 = sshll.u32 %s3081_s27, 3 }
   0xe   : > { %v2296_v6 = vld [vmem:[%s3072_s1 + $0x20] sm:$0xff]  ;;  %v2297_v7 = vld [vmem:[%s3072_s1 + $0x28] sm:$0xff]  ;;  %v2298_v8 = vld [vmem:[%s3072_s1 + $0x30] sm:$0xff]  ;;  %s2631_s6 = scalar_lea.vmem %s3071_s0, %s2291_s28  ;;  %s2923_s30 = scalar_lea.vmem %s3075_s4, %s1864_s25 }
   0xf   : > { %v2317_v9 = vld [vmem:[%s3072_s1 + $0xc8] sm:$0xff]  ;;  %v2299_v10 = vld [vmem:[%s3072_s1 + $0x38] sm:$0xff]  ;;  %v2318_v11 = vld [vmem:[%s3072_s1 + $0xd0] sm:$0xff] }
  0x10   : > { %v2300_v12 = vld [vmem:[%s3072_s1 + $0x40] sm:$0xff]  ;;  %v2319_v14 = vld [vmem:[%s3072_s1 + $0xd8] sm:$0xff]  ;;  %v2301_v17 = vld [vmem:[%s3072_s1 + $0x48] sm:$0xff] }
  0x11   : > { %635 = vmatpush.bf16.msra.mxu0 %v2324_v1  ;;  %2391 = vmatpush.bf16.msra.mxu3 %v2324_v1  ;;  %v2320_v19 = vld [vmem:[%s3072_s1 + $0xe0] sm:$0xff]  ;;  %v2302_v22 = vld [vmem:[%s3072_s1 + $0x50] sm:$0xff]  ;;  %v2321_v24 = vld [vmem:[%s3072_s1 + $0xe8] sm:$0xff] }
  0x12   : > { %v2303_v27 = vld [vmem:[%s3072_s1 + $0x58] sm:$0xff]  ;;  %v2322_v29 = vld [vmem:[%s3072_s1 + $0xf0] sm:$0xff]  ;;  %v2304_v32 = vld [vmem:[%s3072_s1 + $0x60] sm:$0xff] }
  0x13   : > { %v2323_v34 = vld [vmem:[%s3072_s1 + $0xf8] sm:$0xff]  ;;  %v2305_v36 = vld [vmem:[%s3072_s1 + $0x68] sm:$0xff]  ;;  %v2306_v39 = vld [vmem:[%s3072_s1 + $0x70] sm:$0xff] }
  0x14   : > { %2001 = vmatmul.msk.bf16.vlgmr.msra.gmra.mxu0 %vm531_vm0, %v2292_v2  ;;  %2026 = vmatmul.msk.bf16.vlgmr.msra.gmra.mxu3 %vm531_vm0, %v2317_v9  ;;  %v2307_v43 = vld [vmem:[%s3072_s1 + $0x78] sm:$0xff]  ;;  %v2308_v50 = vld [vmem:[%s3072_s1 + $0x80] sm:$0xff]  ;;  %v2309_v58 = vld [vmem:[%s3072_s1 + $0x88] sm:$0xff] }
  0x15   : > { %v2163_v61 = vld [vmem:[%s2631_s6 + $0x100] sm:$0xf]  ;;  %v2360_v62 = vld [vmem:[%s2631_s6 + $0x10c] sm:$0xf0] }
  0x16   : > { %v2164_v63 = vor.u32 %v2360_v62, %v2163_v61 }
  0x24   : > { %2002 = vmatmul.msk.bf16.gmra.mxu0 %vm531_vm0, %v2293_v3  ;;  %2027 = vmatmul.msk.bf16.gmra.mxu3 %vm531_vm0, %v2318_v11  ;;  %v2310_v3 = vld [vmem:[%s3072_s1 + $0x90] sm:$0xff] }
  0x34   : > { %2003 = vmatmul.msk.bf16.gmra.mxu0 %vm531_vm0, %v2294_v4  ;;  %2028 = vmatmul.msk.bf16.gmra.mxu3 %vm531_vm0, %v2319_v14 }
  0x44   : > { %2004 = vmatmul.msk.bf16.gmra.mxu0 %vm531_vm0, %v2295_v5  ;;  %2029 = vmatmul.msk.bf16.gmra.mxu3 %vm531_vm0, %v2320_v19 }
  0x54   : > { %2005 = vmatmul.msk.bf16.gmra.mxu0 %vm531_vm0, %v2296_v6  ;;  %2030 = vmatmul.msk.bf16.gmra.mxu3 %vm531_vm0, %v2321_v24  ;;  %v2179_v6 = vld [vmem:[%s2631_s6 + $0x120] sm:$0xf] }
  0x55   : > { %v2211_v24 = vld [vmem:[%s2631_s6 + $0x160] sm:$0xf] }
  0x64   : > { %2006 = vmatmul.msk.bf16.gmra.mxu0 %vm531_vm0, %v2297_v7  ;;  %2031 = vmatmul.msk.bf16.gmra.mxu3 %vm531_vm0, %v2322_v29  ;;  %v2364_v7 = vld [vmem:[%s2631_s6 + $0x12c] sm:$0xf0]  ;;  %v2313_v29 = vld [vmem:[%s3072_s1 + $0xa8] sm:$0xff] }
  0x74   : > { %2007 = vmatmul.msk.bf16.gmra.mxu0 %vm531_vm0, %v2298_v8  ;;  %2032 = vmatmul.msk.bf16.gmra.mxu3 %vm531_vm0, %v2323_v34  ;;  %v2180_v8 = vor.u32 %v2364_v7, %v2179_v6  ;;  %v2376_v34 = vld [vmem:[%s2631_s6 + $0x18c] sm:$0xf0]  ;;  %v2275_v6 = vld [vmem:[%s2631_s6 + $0x1e0] sm:$0xf] }
  0x75   : > { %v2388_v7 = vld [vmem:[%s2631_s6 + $0x1ec] sm:$0xf0] }
  0x84   : > { %2008 = vmatmul.msk.bf16.gmra.mxu0 %vm531_vm0, %v2299_v10 }
  0x91   : > { %v637_v13 = vpop.f32.mrf.mxu0 }
  0x94   : > { %2009 = vmatmul.msk.bf16.gmra.mxu0 %vm531_vm0, %v2300_v12  ;;  %v2311_v12 = vld [vmem:[%s3072_s1 + $0x98] sm:$0xff] }
  0x97   : > { %v2593_v42 = vpop.f32.mrf.mxu3 }
  0x99   : > { %v639_v15 = vpop.f32.mrf.mxu0 }
  0x9a   : > { %v2549_v16 = vpack.c.bf16 %v639_v15, %v637_v13  ;;  %v2195_v15 = vld [vmem:[%s2631_s6 + $0x140] sm:$0xf] }
  0x9f   : > { %v2598_v45 = vpop.f32.mrf.mxu3 }
  0xa1   : > { %v642_v18 = vpop.f32.mrf.mxu0 }
  0xa4   : > { %2010 = vmatmul.msk.bf16.gmra.mxu0 %vm531_vm0, %v2301_v17 }
  0xa7   : > { %v2601_v47 = vpop.f32.mrf.mxu3 }
  0xa9   : > { %v644_v20 = vpop.f32.mrf.mxu0 }
  0xaa   : > { %v2559_v21 = vpack.c.bf16 %v644_v20, %v642_v18 }
  0xaf   : > { %v2608_v52 = vpop.f32.mrf.mxu3 }
  0xb1   : > { %v647_v23 = vpop.f32.mrf.mxu0 }
  0xb4   : > { %2011 = vmatmul.msk.bf16.gmra.mxu0 %vm531_vm0, %v2302_v22 }
  0xb7   : > { %v2614_v56 = vpop.f32.mrf.mxu3 }
  0xb9   : > { %v649_v25 = vpop.f32.mrf.mxu0 }
  0xba   : > { %v895_v26 = vpack.c.bf16 %v649_v25, %v647_v23  ;;  %v2372_v25 = vld [vmem:[%s2631_s6 + $0x16c] sm:$0xf0] }
  0xbf   : > { %v2626_v60 = vpop.f32.mrf.mxu3 }
  0xc1   : > { %v652_v28 = vpop.f32.mrf.mxu0 }
  0xc4   : > { %2012 = vmatmul.msk.bf16.gmra.mxu0 %vm531_vm0, %v2303_v27 }
  0xc7   : > { %v777_v1 = vpop.f32.mrf.mxu3 }
  0xc9   : > { %v654_v30 = vpop.f32.mrf.mxu0 }
  0xca   : > { %v896_v31 = vpack.c.bf16 %v654_v30, %v652_v28 }
  0xcf   : > { %v779_v5 = vpop.f32.mrf.mxu3 }
  0xd1   : > { %v657_v33 = vpop.f32.mrf.mxu0 }
  0xd4   : > { %2013 = vmatmul.msk.bf16.gmra.mxu0 %vm531_vm0, %v2304_v32 }
  0xd7   : > { %v782_v10 = vpop.f32.mrf.mxu3 }
  0xd9   : > { %v659_v35 = vpop.f32.mrf.mxu0 }
  0xda   : > { %v897_v54 = vpack.c.bf16 %v659_v35, %v657_v33  ;;  %v2227_v33 = vld [vmem:[%s2631_s6 + $0x180] sm:$0xf] }
  0xdf   : > { %v784_v14 = vpop.f32.mrf.mxu3 }
  0xe1   : > { %v662_v37 = vpop.f32.mrf.mxu0 }
  0xe4   : > { %2014 = vmatmul.msk.bf16.gmra.mxu0 %vm531_vm0, %v2305_v36  ;;  %v2228_v36 = vor.u32 %v2376_v34, %v2227_v33 }
  0xe7   : > { %v787_v19 = vpop.f32.mrf.mxu3 }
  0xe9   : > { %v664_v38 = vpop.f32.mrf.mxu0 }
  0xea   : > { %v898_v53 = vpack.c.bf16 %v664_v38, %v662_v37  ;;  %v922_v38 = vpack.c.bf16 %v784_v14, %v782_v10  ;;  %v2276_v10 = vor.u32 %v2388_v7, %v2275_v6  ;;  %v2051_v14 = vld [vmem:[%s2631_s6 + $0x20] sm:$0xf]  ;;  %v2117_v6 = vld [vmem:[%s2631_s6 + $0xb0] sm:$0xf0] }
  0xef   : > { %v789_v23 = vpop.f32.mrf.mxu3 }
  0xf0   : > { %v923_v35 = vpack.c.bf16 %v789_v23, %v787_v19 }
  0xf1   : > { %v667_v40 = vpop.f32.mrf.mxu0 }
  0xf4   : > { %2015 = vmatmul.msk.bf16.gmra.mxu0 %vm531_vm0, %v2306_v39  ;;  %v2314_v39 = vld [vmem:[%s3072_s1 + $0xb0] sm:$0xff] }
  0xf7   : > { %v792_v28 = vpop.f32.mrf.mxu3 }
  0xf9   : > { %v669_v41 = vpop.f32.mrf.mxu0 }
  0xfa   : > { %v899_v49 = vpack.c.bf16 %v669_v41, %v667_v40  ;;  %v921_v41 = vpack.c.bf16 %v779_v5, %v777_v1 }
 0x101   : > { %v672_v44 = vpop.f32.mrf.mxu0 }
 0x104   : > { %2016 = vmatmul.msk.bf16.gmra.mxu0 %vm531_vm0, %v2307_v43  ;;  %v2243_v43 = vld [vmem:[%s2631_s6 + $0x1a0] sm:$0xf] }
 0x109   : > { %v674_v46 = vpop.f32.mrf.mxu0 }
 0x10a   : > { %v900_v48 = vpack.c.bf16 %v674_v46, %v672_v44  ;;  %v2380_v44 = vld [vmem:[%s2631_s6 + $0x1ac] sm:$0xf0]  ;;  %v920_v46 = vpack.c.bf16 %v2626_v60, %v2614_v56  ;;  %v2259_v56 = vld [vmem:[%s2631_s6 + $0x1c0] sm:$0xf] }
 0x10b   : > { %v2384_v60 = vld [vmem:[%s2631_s6 + $0x1cc] sm:$0xf0] }
 0x10c   : > { %1245 = vmatpush.bf16.msra.mxu1 %v900_v48  ;;  %2392 = vmatpush.bf16.msra.mxu2 %v900_v48  ;;  %v2244_v48 = vor.u32 %v2380_v44, %v2243_v43  ;;  %v2260_v61 = vor.u32 %v2384_v60, %v2259_v56  ;;  %v2085_v43 = vld [vmem:[%s2631_s6 + $0x70] sm:$0xf0]  ;;  %v2342_v56 = vld [vmem:[%s2631_s6 + $0x84] sm:$0xf] }
 0x10d   : > { %v2101_v60 = vld [vmem:[%s2631_s6 + $0x90] sm:$0xf0] }
 0x110   : > { %1246 = vmatpush.bf16.msra.mxu1 %v899_v49  ;;  %2393 = vmatpush.bf16.msra.mxu2 %v899_v49 }
 0x111   : > { %v2606_v51 = vpop.f32.mrf.mxu0 }
 0x114   : > { %2017 = vmatmul.msk.bf16.gmra.mxu0 %vm531_vm0, %v2308_v50  ;;  %1247 = vmatpush.bf16.msra.mxu1 %v898_v53  ;;  %v919_v50 = vpack.c.bf16 %v2608_v52, %v2601_v47  ;;  %v2035_v47 = vld [vmem:[%s2631_s6] sm:$0xf] }
 0x115   : > { %2394 = vmatpush.bf16.msra.mxu2 %v898_v53  ;;  %v918_v53 = vpack.c.bf16 %v2598_v45, %v2593_v42  ;;  %v2316_v45 = vld [vmem:[%s3072_s1 + $0xc0] sm:$0xff] }
 0x118   : > { %1248 = vmatpush.bf16.msra.mxu1 %v897_v54 }
 0x119   : > { %2395 = vmatpush.bf16.msra.mxu2 %v897_v54  ;;  %v2612_v55 = vpop.f32.mrf.mxu0  ;;  %v2315_v54 = vld [vmem:[%s3072_s1 + $0xb8] sm:$0xff] }
 0x11a   : > { %v901_v57 = vpack.c.bf16 %v2612_v55, %v2606_v51  ;;  %v2330_v51 = vld [vmem:[%s2631_s6 + $0x24] sm:$0xf]  ;;  %v2053_v55 = vld [vmem:[%s2631_s6 + $0x30] sm:$0xf0] }
 0x11c   : > { %1249 = vmatpush.bf16.msra.mxu1 %v896_v31 }
 0x11d   : > { %2396 = vmatpush.bf16.msra.mxu2 %v896_v31  ;;  %v794_v31 = vpop.f32.mrf.mxu3 }
 0x11e   : > { %v924_v32 = vpack.c.bf16 %v794_v31, %v792_v28  ;;  %v2069_v31 = vld [vmem:[%s2631_s6 + $0x50] sm:$0xf0] }
 0x120   : > { %1250 = vmatpush.bf16.msra.mxu1 %v895_v26 }
 0x121   : > { %2397 = vmatpush.bf16.msra.mxu2 %v895_v26  ;;  %v2624_v59 = vpop.f32.mrf.mxu0  ;;  %v2212_v26 = vor.u32 %v2372_v25, %v2211_v24  ;;  %v2083_v24 = vld [vmem:[%s2631_s6 + $0x60] sm:$0xf] }
 0x124   : > { %2018 = vmatmul.msk.bf16.gmra.mxu0 %vm531_vm0, %v2309_v58  ;;  %1251 = vmatpush.bf16.msra.mxu1 %v2559_v21 }
 0x125   : > { %2398 = vmatpush.bf16.msra.mxu2 %v2559_v21  ;;  %v2312_v21 = vld [vmem:[%s3072_s1 + $0xa0] sm:$0xff] }
 0x128   : > { %1252 = vmatpush.bf16.msra.mxu1 %v2549_v16 }
 0x129   : > { %2399 = vmatpush.bf16.msra.mxu2 %v2549_v16  ;;  %v2640_v0 = vpop.f32.mrf.mxu0  ;;  %v2368_v16 = vld [vmem:[%s2631_s6 + $0x14c] sm:$0xf0] }
 0x12a   : > { %v902_v2 = vpack.c.bf16 %v2640_v0, %v2624_v59  ;;  %v2196_v17 = vor.u32 %v2368_v16, %v2195_v15  ;;  %v2332_v16 = vld [vmem:[%s2631_s6 + $0x2c] sm:$0xf0] }
 0x12c   : > { %1293 = vmatmul.bf16.vlgmr.msra.gmra.mxu2 %v2164_v63  ;;  %1512 = vmatpush.bf16.msrb.mxu1 %v924_v32  ;;  %v2328_v63 = vld [vmem:[%s2631_s6 + $0xc] sm:$0xf0] }
 0x12d   : > { %v2036_v1 = vor.u32 %v2328_v63, %v2035_v47  ;;  %v2352_v63 = vld [vmem:[%s2631_s6 + $0xcc] sm:$0xf0] }
 0x12f   : > { %1253 = vmatmul.bf16.vlgmr.msra.gmra.mxu1 %v2036_v1 }
 0x130   : > { %1513 = vmatpush.bf16.msrb.mxu1 %v923_v35  ;;  %v2099_v35 = vld [vmem:[%s2631_s6 + $0x80] sm:$0xf] }
 0x131   : > { %v2647_v4 = vpop.f32.mrf.mxu0 }
 0x134   : > { %2019 = vmatmul.msk.bf16.gmra.mxu0 %vm531_vm0, %v2310_v3  ;;  %1514 = vmatpush.bf16.msrb.mxu1 %v922_v38 }
 0x138   : > { %1515 = vmatpush.bf16.msrb.mxu1 %v921_v41  ;;  %v2338_v41 = vld [vmem:[%s2631_s6 + $0x64] sm:$0xf] }
 0x139   : > { %v2652_v9 = vpop.f32.mrf.mxu0 }
 0x13a   : > { %v903_v11 = vpack.c.bf16 %v2652_v9, %v2647_v4  ;;  %v2067_v4 = vld [vmem:[%s2631_s6 + $0x40] sm:$0xf] }
 0x13c   : > { %1298 = vmatmul.bf16.gmra.mxu2 %v2180_v8  ;;  %1516 = vmatpush.bf16.msrb.mxu1 %v920_v46  ;;  %v2088_v46 = vor.u32 %v2338_v41, %v2085_v43 }
 0x140   : > { %1517 = vmatpush.bf16.msrb.mxu1 %v919_v50  ;;  %v2348_v50 = vld [vmem:[%s2631_s6 + $0xac] sm:$0xf0] }
 0x141   : > { %v2659_v13 = vpop.f32.mrf.mxu0 }
 0x144   : > { %2020 = vmatmul.msk.bf16.gmra.mxu0 %vm531_vm0, %v2311_v12  ;;  %1518 = vmatpush.bf16.msrb.mxu1 %v918_v53 }
 0x149   : > { %v2664_v18 = vpop.f32.mrf.mxu0 }
 0x14a   : > { %v904_v20 = vpack.c.bf16 %v2664_v18, %v2659_v13 }
 0x14c   : > { %1303 = vmatmul.bf16.gmra.mxu2 %v2196_v17  ;;  %v2052_v17 = vor.u32 %v2332_v16, %v2051_v14  ;;  %v2147_v14 = vld [vmem:[%s2631_s6 + $0xe0] sm:$0xf]  ;;  %v2356_v16 = vld [vmem:[%s2631_s6 + $0xec] sm:$0xf0] }
 0x14e   : > { %1258 = vmatmul.bf16.gmra.mxu1 %v2052_v17  ;;  %v2148_v17 = vor.u32 %v2356_v16, %v2147_v14 }
 0x151   : > { %v2671_v22 = vpop.f32.mrf.mxu0 }
 0x154   : > { %2021 = vmatmul.msk.bf16.gmra.mxu0 %vm531_vm0, %v2312_v21  ;;  %v2326_v21 = vld [vmem:[%s2631_s6 + $0x4] sm:$0xf] }
 0x159   : > { %v699_v27 = vpop.f32.mrf.mxu0 }
 0x15a   : > { %v905_v8 = vpack.c.bf16 %v699_v27, %v2671_v22  ;;  %v2037_v22 = vld [vmem:[%s2631_s6 + $0x10] sm:$0xf0] }
 0x15b   : > { %v2040_v23 = vor.u32 %v2326_v21, %v2037_v22 }
 0x15c   : > { %1308 = vmatmul.bf16.gmra.mxu2 %v2212_v26  ;;  %v2340_v26 = vld [vmem:[%s2631_s6 + $0x6c] sm:$0xf0] }
 0x15d   : > { %v2084_v27 = vor.u32 %v2340_v26, %v2083_v24 }
 0x161   : > { %v702_v30 = vpop.f32.mrf.mxu0 }
 0x164   : > { %2022 = vmatmul.msk.bf16.gmra.mxu0 %vm531_vm0, %v2313_v29 }
 0x169   : > { %v704_v37 = vpop.f32.mrf.mxu0 }
 0x16a   : > { %v906_v5 = vpack.c.bf16 %v704_v37, %v702_v30  ;;  %v2334_v30 = vld [vmem:[%s2631_s6 + $0x44] sm:$0xf]  ;;  %v2344_v37 = vld [vmem:[%s2631_s6 + $0x8c] sm:$0xf0] }
 0x16b   : > { %v2072_v33 = vor.u32 %v2334_v30, %v2069_v31  ;;  %v2100_v38 = vor.u32 %v2344_v37, %v2099_v35  ;;  %v2149_v35 = vld [vmem:[%s2631_s6 + $0xf0] sm:$0xf0] }
 0x16c   : > { %1313 = vmatmul.bf16.gmra.mxu2 %v2228_v36 }
 0x171   : > { %v707_v40 = vpop.f32.mrf.mxu0 }
 0x174   : > { %2023 = vmatmul.msk.bf16.gmra.mxu0 %vm531_vm0, %v2314_v39 }
 0x179   : > { %v709_v49 = vpop.f32.mrf.mxu0 }
 0x17a   : > { %v907_v42 = vpack.c.bf16 %v709_v49, %v707_v40  ;;  %v2115_v49 = vld [vmem:[%s2631_s6 + $0xa0] sm:$0xf] }
 0x17b   : > { %v2116_v53 = vor.u32 %v2348_v50, %v2115_v49  ;;  %v2045_v49 = vld [vmem:[%s2631_s6 + $0x18] sm:$0xf0] }
 0x17c   : > { %1318 = vmatmul.bf16.gmra.mxu2 %v2244_v48 }
 0x181   : > { %v712_v58 = vpop.f32.mrf.mxu0 }
 0x184   : > { %2024 = vmatmul.msk.bf16.gmra.mxu0 %vm531_vm0, %v2315_v54 }
 0x189   : > { %v714_v62 = vpop.f32.mrf.mxu0 }
 0x18a   : > { %v908_v52 = vpack.c.bf16 %v714_v62, %v712_v58  ;;  %v2104_v62 = vor.u32 %v2342_v56, %v2101_v60  ;;  %v2043_v56 = vld [vmem:[%s2631_s6 + $0x8] sm:$0xf] }
 0x18c   : > { %1323 = vmatmul.bf16.gmra.mxu2 %v2260_v61 }
 0x18d   : > { %1334 = vmatpush.bf16.msrb.mxu2 %v908_v52  ;;  %v2131_v52 = vld [vmem:[%s2631_s6 + $0xc0] sm:$0xf] }
 0x18e   : > { %v2132_v1 = vor.u32 %v2352_v63, %v2131_v52  ;;  %v2059_v63 = vld [vmem:[%s2631_s6 + $0x28] sm:$0xf] }
 0x191   : > { %1335 = vmatpush.bf16.msrb.mxu2 %v907_v42  ;;  %v2705_v3 = vpop.f32.mrf.mxu0 }
 0x194   : > { %2025 = vmatmul.msk.bf16.gmra.mxu0 %vm531_vm0, %v2316_v45 }
 0x195   : > { %1336 = vmatpush.bf16.msrb.mxu2 %v906_v5  ;;  %v2346_v5 = vld [vmem:[%s2631_s6 + $0xa4] sm:$0xf] }
 0x199   : > { %1337 = vmatpush.bf16.msrb.mxu2 %v905_v8  ;;  %v2711_v12 = vpop.f32.mrf.mxu0  ;;  %v2120_v8 = vor.u32 %v2346_v5, %v2117_v6  ;;  %v2335_v6 = vld [vmem:[%s2631_s6 + $0x4c] sm:$0xf] }
 0x19a   : > { %v909_v15 = vpack.c.bf16 %v2711_v12, %v2705_v3  ;;  %v2362_v3 = vld [vmem:[%s2631_s6 + $0x124] sm:$0xf]  ;;  %v2181_v12 = vld [vmem:[%s2631_s6 + $0x130] sm:$0xf0] }
 0x19b   : > { %v2184_v5 = vor.u32 %v2362_v3, %v2181_v12  ;;  %v2347_v12 = vld [vmem:[%s2631_s6 + $0xac] sm:$0xf] }
 0x19c   : > { %1328 = vmatmul.bf16.gmra.mxu2 %v2276_v10 }
 0x19d   : > { %1338 = vmatpush.bf16.msrb.mxu2 %v904_v20 }
 0x1a1   : > { %1339 = vmatpush.bf16.msrb.mxu2 %v903_v11  ;;  %v2723_v19 = vpop.f32.mrf.mxu0  ;;  %v2336_v11 = vld [vmem:[%s2631_s6 + $0x4c] sm:$0xf0] }
 0x1a2   : > { %v2068_v18 = vor.u32 %v2336_v11, %v2067_v4  ;;  %v2133_v4 = vld [vmem:[%s2631_s6 + $0xd0] sm:$0xf0] }
 0x1a4   : > { %1263 = vmatmul.bf16.gmra.mxu1 %v2068_v18 }
 0x1a5   : > { %1340 = vmatpush.bf16.msrb.mxu2 %v902_v2  ;;  %v2056_v2 = vor.u32 %v2330_v51, %v2053_v55 }
 0x1a9   : > { %1341 = vmatpush.bf16.msrb.mxu2 %v901_v57  ;;  %v2733_v13 = vpop.f32.mrf.mxu0 }
 0x1aa   : > { %v910_v9 = vpack.c.bf16 %v2733_v13, %v2723_v19 }
 0x1ac   : > { %1342 = vmatmul.bf16.vlgmr.msrb.gmra.mxu2 %v2040_v23  ;;  %v2350_v23 = vld [vmem:[%s2631_s6 + $0xc4] sm:$0xf] }
 0x1ad   : > { %v2136_v18 = vor.u32 %v2350_v23, %v2133_v4  ;;  %v2075_v23 = vld [vmem:[%s2631_s6 + $0x48] sm:$0xf]  ;;  %v2337_v4 = vld [vmem:[%s2631_s6 + $0x54] sm:$0xf0] }
 0x1af   : > { %v2739_v59 = vpop.f32.mrf.mxu2 }
 0x1b1   : > { %v2741_v0 = vpop.f32.mrf.mxu0 }
 0x1b4   : > { %1268 = vmatmul.bf16.gmra.mxu1 %v2084_v27 }
 0x1b7   : > { %v2745_v57 = vpop.f32.mrf.mxu2 }
 0x1b9   : > { %v2747_v20 = vpop.f32.mrf.mxu0 }
 0x1ba   : > { %v911_v25 = vpack.c.bf16 %v2747_v20, %v2741_v0  ;;  %v2331_v20 = vld [vmem:[%s2631_s6 + $0x2c] sm:$0xf] }
 0x1bc   : > { %1347 = vmatmul.bf16.gmra.mxu2 %v2056_v2  ;;  %v1254_v2 = vpop.f32.mrf.mxu1 }
 0x1bf   : > { %v2753_v28 = vpop.f32.mrf.mxu2 }
 0x1c1   : > { %v2755_v29 = vpop.f32.mrf.mxu0 }
 0x1c4   : > { %1273 = vmatmul.bf16.gmra.mxu1 %v2100_v38  ;;  %v2799_v31 = vpop.f32.mrf.mxu1 }
 0x1c7   : > { %v2759_v32 = vpop.f32.mrf.mxu2 }
 0x1c9   : > { %v2761_v34 = vpop.f32.mrf.mxu0 }
 0x1ca   : > { %v912_v36 = vpack.c.bf16 %v2761_v34, %v2755_v29  ;;  %v2329_v29 = vld [vmem:[%s2631_s6 + $0x14] sm:$0xf0]  ;;  %v2358_v34 = vld [vmem:[%s2631_s6 + $0x104] sm:$0xf] }
 0x1cc   : > { %1352 = vmatmul.bf16.gmra.mxu2 %v2072_v33  ;;  %v2354_v33 = vld [vmem:[%s2631_s6 + $0xe4] sm:$0xf] }
 0x1cd   : > { %v2152_v41 = vor.u32 %v2354_v33, %v2149_v35 }
 0x1cf   : > { %v2767_v39 = vpop.f32.mrf.mxu2 }
 0x1d1   : > { %v737_v40 = vpop.f32.mrf.mxu0 }
 0x1d4   : > { %1278 = vmatmul.bf16.gmra.mxu1 %v2116_v53  ;;  %v1259_v53 = vpop.f32.mrf.mxu1 }
 0x1d7   : > { %v2771_v44 = vpop.f32.mrf.mxu2 }
 0x1d9   : > { %v739_v48 = vpop.f32.mrf.mxu0 }
 0x1da   : > { %v913_v37 = vpack.c.bf16 %v739_v48, %v737_v40 }
 0x1dc   : > { %1357 = vmatmul.bf16.gmra.mxu2 %v2088_v46  ;;  %v2327_v46 = vld [vmem:[%s2631_s6 + $0xc] sm:$0xf] }
 0x1dd   : > { %v2048_v40 = vor.u32 %v2327_v46, %v2045_v49  ;;  %v2341_v46 = vld [vmem:[%s2631_s6 + $0x74] sm:$0xf0]  ;;  %v2370_v49 = vld [vmem:[%s2631_s6 + $0x164] sm:$0xf] }
 0x1df   : > { %v2775_v54 = vpop.f32.mrf.mxu2 }
 0x1e1   : > { %v742_v58 = vpop.f32.mrf.mxu0 }
 0x1e4   : > { %1283 = vmatmul.bf16.gmra.mxu1 %v2132_v1  ;;  %v2333_v1 = vld [vmem:[%s2631_s6 + $0x34] sm:$0xf0] }
 0x1e7   : > { %v2779_v61 = vpop.f32.mrf.mxu2 }
 0x1e9   : > { %v744_v47 = vpop.f32.mrf.mxu0 }
 0x1ea   : > { %v914_v30 = vpack.c.bf16 %v744_v47, %v742_v58  ;;  %v2815_v58 = vpop.f32.mrf.mxu1 }
 0x1ec   : > { %1362 = vmatmul.bf16.gmra.mxu2 %v2104_v62  ;;  %v2044_v62 = vor.u32 %v2329_v29, %v2043_v56 }
 0x1ef   : > { %v2783_v42 = vpop.f32.mrf.mxu2 }
 0x1f1   : > { %v747_v45 = vpop.f32.mrf.mxu0 }
 0x1f4   : > { %1288 = vmatmul.bf16.gmra.mxu1 %v2148_v17 }
 0x1f7   : > { %v2787_v7 = vpop.f32.mrf.mxu2 }
 0x1f9   : > { %v749_v10 = vpop.f32.mrf.mxu0 }
 0x1fa   : > { %v915_v24 = vpack.c.bf16 %v749_v10, %v747_v45  ;;  %v2060_v45 = vor.u32 %v2333_v1, %v2059_v63  ;;  %v2229_v63 = vld [vmem:[%s2631_s6 + $0x190] sm:$0xf0] }
 0x1fc   : > { %1367 = vmatmul.bf16.gmra.mxu2 %v2120_v8  ;;  %v2077_v8 = vld [vmem:[%s2631_s6 + $0x58] sm:$0xf0] }
 0x1fd   : > { %v2080_v14 = vor.u32 %v2335_v6, %v2077_v8  ;;  %v2123_v8 = vld [vmem:[%s2631_s6 + $0xa8] sm:$0xf] }
 0x1ff   : > { %v2791_v21 = vpop.f32.mrf.mxu2 }
 0x201   : > { %v752_v22 = vpop.f32.mrf.mxu0 }
 0x207   : > { %v2795_v11 = vpop.f32.mrf.mxu2 }
 0x209   : > { %v754_v51 = vpop.f32.mrf.mxu0 }
 0x20a   : > { %v916_v55 = vpack.c.bf16 %v754_v51, %v752_v22  ;;  %v2197_v51 = vld [vmem:[%s2631_s6 + $0x150] sm:$0xf0] }
 0x20c   : > { %1372 = vmatmul.bf16.gmra.mxu2 %v2136_v18  ;;  %1423 = vmatpush.bf16.msrb.mxu3 %v916_v55  ;;  %v2366_v18 = vld [vmem:[%s2631_s6 + $0x144] sm:$0xf] }
 0x20f   : > { %v2797_v26 = vpop.f32.mrf.mxu2 }
 0x210   : > { %1424 = vmatpush.bf16.msrb.mxu3 %v915_v24  ;;  %v2200_v24 = vor.u32 %v2366_v18, %v2197_v51  ;;  %v2351_v51 = vld [vmem:[%s2631_s6 + $0xcc] sm:$0xf] }
 0x211   : > { %v757_v27 = vpop.f32.mrf.mxu0 }
 0x214   : > { %1425 = vmatpush.bf16.msrb.mxu3 %v914_v30  ;;  %v2093_v30 = vld [vmem:[%s2631_s6 + $0x78] sm:$0xf0] }
 0x217   : > { %v2803_v38 = vpop.f32.mrf.mxu2 }
 0x218   : > { %1426 = vmatpush.bf16.msrb.mxu3 %v913_v37 }
 0x219   : > { %v759_v43 = vpop.f32.mrf.mxu0 }
 0x21a   : > { %v917_v50 = vpack.c.bf16 %v759_v43, %v757_v27  ;;  %v2339_v27 = vld [vmem:[%s2631_s6 + $0x6c] sm:$0xf]  ;;  %v2091_v43 = vld [vmem:[%s2631_s6 + $0x68] sm:$0xf] }
 0x21b   : > { %v2096_v33 = vor.u32 %v2339_v27, %v2093_v30  ;;  %v2139_v30 = vld [vmem:[%s2631_s6 + $0xc8] sm:$0xf] }
 0x21c   : > { %1377 = vmatmul.bf16.gmra.mxu2 %v2152_v41  ;;  %1427 = vmatpush.bf16.msrb.mxu3 %v912_v36  ;;  %v2165_v36 = vld [vmem:[%s2631_s6 + $0x110] sm:$0xf0] }
 0x21d   : > { %1519 = vmatpush.bf16.msrb.mxu1 %v917_v50  ;;  %v2168_v0 = vor.u32 %v2358_v34, %v2165_v36  ;;  %v2213_v50 = vld [vmem:[%s2631_s6 + $0x170] sm:$0xf0]  ;;  %v2343_v34 = vld [vmem:[%s2631_s6 + $0x8c] sm:$0xf]  ;;  %v2109_v36 = vld [vmem:[%s2631_s6 + $0x98] sm:$0xf0] }
 0x21e   : > { %v2216_v29 = vor.u32 %v2370_v49, %v2213_v50 }
 0x21f   : > { %v2810_v48 = vpop.f32.mrf.mxu2 }
 0x220   : > { %1428 = vmatpush.bf16.msrb.mxu3 %v911_v25  ;;  %1520 = vmatmul.bf16.vlgmr.msrb.gmra.mxu1 %v2048_v40  ;;  %v2061_v25 = vld [vmem:[%s2631_s6 + $0x38] sm:$0xf0]  ;;  %v2092_v40 = vor.u32 %v2341_v46, %v2091_v43  ;;  %v2261_v43 = vld [vmem:[%s2631_s6 + $0x1d0] sm:$0xf0] }
 0x221   : > { %v1264_v19 = vpop.f32.mrf.mxu1  ;;  %v2064_v13 = vor.u32 %v2331_v20, %v2061_v25 }
 0x224   : > { %1429 = vmatpush.bf16.msrb.mxu3 %v910_v9 }
 0x227   : > { %v2824_v60 = vpop.f32.mrf.mxu2 }
 0x228   : > { %1430 = vmatpush.bf16.msrb.mxu3 %v909_v15 }
 0x229   : > { %v2833_v52 = vpop.f32.mrf.mxu1 }
 0x22b   : > { %1431 = vmatmul.bf16.vlgmr.msrb.gmra.mxu3 %v2044_v62  ;;  %v2112_v62 = vor.u32 %v2343_v34, %v2109_v36 }
 0x22c   : > { %1382 = vmatmul.bf16.gmra.mxu2 %v2168_v0 }
 0x22f   : > { %v1343_v9 = vpop.f32.mrf.mxu2 }
 0x230   : > { %v2831_v47 = vadd.f32 %v1343_v9, %v1254_v2  ;;  %1525 = vmatmul.bf16.gmra.mxu1 %v2064_v13  ;;  %v2076_v2 = vor.u32 %v2337_v4, %v2075_v23  ;;  %v2345_v13 = vld [vmem:[%s2631_s6 + $0x94] sm:$0xf0]  ;;  %v2374_v9 = vld [vmem:[%s2631_s6 + $0x184] sm:$0xf] }
 0x231   : > { %v1269_v10 = vpop.f32.mrf.mxu1  ;;  %v2232_v3 = vor.u32 %v2374_v9, %v2229_v63 }
 0x237   : > { %v2839_v15 = vpop.f32.mrf.mxu2 }
 0x239   : > { %v2845_v22 = vpop.f32.mrf.mxu1 }
 0x23b   : > { %1436 = vmatmul.bf16.gmra.mxu3 %v2060_v45  ;;  %v2125_v45 = vld [vmem:[%s2631_s6 + $0xb8] sm:$0xf0] }
 0x23c   : > { %1387 = vmatmul.bf16.gmra.mxu2 %v2184_v5  ;;  %v2128_v6 = vor.u32 %v2347_v12, %v2125_v45 }
 0x23f   : > { %v1348_v16 = vpop.f32.mrf.mxu2 }
 0x240   : > { %v2843_v17 = vadd.f32 %v1348_v16, %v1259_v53  ;;  %1530 = vmatmul.bf16.gmra.mxu1 %v2080_v14  ;;  %v2378_v14 = vld [vmem:[%s2631_s6 + $0x1a4] sm:$0xf]  ;;  %v2245_v16 = vld [vmem:[%s2631_s6 + $0x1b0] sm:$0xf0] }
 0x241   : > { %v2855_v35 = vpop.f32.mrf.mxu1  ;;  %v2248_v18 = vor.u32 %v2378_v14, %v2245_v16 }
 0x247   : > { %v2851_v55 = vpop.f32.mrf.mxu2 }
 0x249   : > { %v2865_v56 = vpop.f32.mrf.mxu1 }
 0x24b   : > { %1441 = vmatmul.bf16.gmra.mxu3 %v2076_v2  ;;  %v2141_v2 = vld [vmem:[%s2631_s6 + $0xd8] sm:$0xf0] }
 0x24c   : > { %1392 = vmatmul.bf16.gmra.mxu2 %v2200_v24  ;;  %v2144_v24 = vor.u32 %v2351_v51, %v2141_v2 }
 0x24f   : > { %v1353_v37 = vpop.f32.mrf.mxu2 }
 0x250   : > { %v2857_v41 = vadd.f32 %v1353_v37, %v1264_v19  ;;  %1535 = vmatmul.bf16.gmra.mxu1 %v2096_v33  ;;  %v2107_v19 = vld [vmem:[%s2631_s6 + $0x88] sm:$0xf]  ;;  %v2353_v33 = vld [vmem:[%s2631_s6 + $0xd4] sm:$0xf0]  ;;  %v2382_v37 = vld [vmem:[%s2631_s6 + $0x1c4] sm:$0xf] }
 0x251   : > { %v2871_v25 = vpop.f32.mrf.mxu1  ;;  %v2108_v1 = vor.u32 %v2345_v13, %v2107_v19  ;;  %v2140_v46 = vor.u32 %v2353_v33, %v2139_v30  ;;  %v2264_v49 = vor.u32 %v2382_v37, %v2261_v43  ;;  %v2386_v19 = vld [vmem:[%s2631_s6 + $0x1e4] sm:$0xf]  ;;  %v2277_v13 = vld [vmem:[%s2631_s6 + $0x1f0] sm:$0xf0]  ;;  %v2918_v37 = vld [vmem:[%s3074_s3] ss:$0 sm:$0xff] }
 0x252   : > { %v2280_v63 = vor.u32 %v2386_v19, %v2277_v13  ;;  %v2187_v43 = vld [vmem:[%s2631_s6 + $0x128] sm:$0xf]  ;;  %v2367_v19 = vld [vmem:[%s2631_s6 + $0x14c] sm:$0xf]  ;;  %v2205_v13 = vld [vmem:[%s2631_s6 + $0x158] sm:$0xf0] }
 0x257   : > { %v2863_v53 = vpop.f32.mrf.mxu2 }
 0x259   : > { %v2879_v5 = vpop.f32.mrf.mxu1 }
 0x25b   : > { %1446 = vmatmul.bf16.gmra.mxu3 %v2092_v40  ;;  %v2355_v40 = vld [vmem:[%s2631_s6 + $0xec] sm:$0xf] }
 0x25c   : > { %1397 = vmatmul.bf16.gmra.mxu2 %v2216_v29  ;;  %v2157_v29 = vld [vmem:[%s2631_s6 + $0xf8] sm:$0xf0] }
 0x25d   : > { %v2160_v34 = vor.u32 %v2355_v40, %v2157_v29 }
 0x25f   : > { %v1358_v0 = vpop.f32.mrf.mxu2 }
 0x260   : > { %v2869_v20 = vadd.f32 %v1358_v0, %v1269_v10  ;;  %1540 = vmatmul.bf16.gmra.mxu1 %v2112_v62  ;;  %v2349_v10 = vld [vmem:[%s2631_s6 + $0xb4] sm:$0xf0]  ;;  %v2155_v62 = vld [vmem:[%s2631_s6 + $0xe8] sm:$0xf] }
 0x261   : > { %v2885_v23 = vpop.f32.mrf.mxu1  ;;  %v2124_v4 = vor.u32 %v2349_v10, %v2123_v8  ;;  %v2357_v0 = vld [vmem:[%s2631_s6 + $0xf4] sm:$0xf0]  ;;  %v2171_v8 = vld [vmem:[%s2631_s6 + $0x108] sm:$0xf] }
 0x262   : > { %v2156_v9 = vor.u32 %v2357_v0, %v2155_v62  ;;  %v2361_v10 = vld [vmem:[%s2631_s6 + $0x114] sm:$0xf0] }
 0x263   : > { %v2172_v16 = vor.u32 %v2361_v10, %v2171_v8  ;;  %v2369_v8 = vld [vmem:[%s2631_s6 + $0x154] sm:$0xf0]  ;;  %v1351_v10 = vadd.f32 %v2851_v55, %v2815_v58 }
 0x267   : > { %v2907_v12 = vpop.f32.mrf.mxu2 }
 0x269   : > { %v2889_v27 = vpop.f32.mrf.mxu1 }
 0x26b   : > { %1451 = vmatmul.bf16.gmra.mxu3 %v2108_v1  ;;  %v2359_v1 = vld [vmem:[%s2631_s6 + $0x10c] sm:$0xf] }
 0x26c   : > { %1402 = vmatmul.bf16.gmra.mxu2 %v2232_v3  ;;  %v2173_v3 = vld [vmem:[%s2631_s6 + $0x118] sm:$0xf0] }
 0x26d   : > { %v2176_v45 = vor.u32 %v2359_v1, %v2173_v3 }
 0x270   : > { %1545 = vmatmul.bf16.gmra.mxu1 %v2128_v6 }
 0x271   : > { %v2895_v50 = vpop.f32.mrf.mxu1 }
 0x279   : > { %v2899_v36 = vpop.f32.mrf.mxu1 }
 0x27b   : > { %1456 = vmatmul.bf16.gmra.mxu3 %v2124_v4  ;;  %v2363_v4 = vld [vmem:[%s2631_s6 + $0x12c] sm:$0xf] }
 0x27c   : > { %1407 = vmatmul.bf16.gmra.mxu2 %v2248_v18  ;;  %v2189_v18 = vld [vmem:[%s2631_s6 + $0x138] sm:$0xf0] }
 0x27d   : > { %v2192_v51 = vor.u32 %v2363_v4, %v2189_v18 }
 0x280   : > { %1550 = vmatmul.bf16.gmra.mxu1 %v2144_v24 }
 0x28b   : > { %1461 = vmatmul.bf16.gmra.mxu3 %v2140_v46  ;;  %v2365_v46 = vld [vmem:[%s2631_s6 + $0x134] sm:$0xf0] }
 0x28c   : > { %1412 = vmatmul.bf16.gmra.mxu2 %v2264_v49  ;;  %v2188_v62 = vor.u32 %v2365_v46, %v2187_v43 }
 0x290   : > { %1555 = vmatmul.bf16.gmra.mxu1 %v2160_v34 }
 0x29b   : > { %1466 = vmatmul.bf16.gmra.mxu3 %v2156_v9  ;;  %v2933_v9 = vpop.f32.mrf.mxu2 }
 0x29c   : > { %1417 = vmatmul.bf16.gmra.mxu2 %v2280_v63  ;;  %v2208_v63 = vor.u32 %v2367_v19, %v2205_v13 }
 0x29d   : > { %v1521_v6 = vpop.f32.mrf.mxu1 }
 0x2a0   : > { %1560 = vmatmul.bf16.gmra.mxu1 %v2176_v45 }
 0x2a3   : > { %v2943_v4 = vpop.f32.mrf.mxu2 }
 0x2a5   : > { %v1523_v14 = vpop.f32.mrf.mxu1 }
 0x2ab   : > { %1471 = vmatmul.bf16.gmra.mxu3 %v2172_v16 }
 0x2ad   : > { %v1526_v2 = vpop.f32.mrf.mxu1 }
 0x2ae   : > { %v1432_v24 = vpop.f32.mrf.mxu3 }
 0x2af   : > { %v1433_v30 = vadd.f32 %v1432_v24, %v2831_v47  ;;  %v1346_v47 = vadd.f32 %v2839_v15, %v2799_v31 }
 0x2b0   : > { %1565 = vmatmul.bf16.gmra.mxu1 %v2192_v51 }
 0x2b1   : > { %v1522_v33 = vadd.f32 %v1521_v6, %v1433_v30  ;;  %v2203_v6 = vld [vmem:[%s2631_s6 + $0x148] sm:$0xf]  ;;  %v2371_v30 = vld [vmem:[%s2631_s6 + $0x16c] sm:$0xf] }
 0x2b2   : > { %v2204_v24 = vor.u32 %v2369_v8, %v2203_v6 }
 0x2b3   : > { %v1704_v49 = vadd.f32 %v2918_v37, %v1522_v33 }
 0x2b5   : > { %v1528_v40 = vpop.f32.mrf.mxu1  ;;  %1736 = vst [vmem:[%s2923_s30] sm:$0xff] %v1704_v49 }
 0x2b6   : > { %v1434_v29 = vpop.f32.mrf.mxu3 }
 0x2b7   : > { %v1435_v34 = vadd.f32 %v1434_v29, %v1346_v47  ;;  %v2951_v47 = vpop.f32.mrf.mxu2  ;;  %v2219_v29 = vld [vmem:[%s2631_s6 + $0x168] sm:$0xf] }
 0x2b9   : > { %v1524_v0 = vadd.f32 %v1523_v14, %v1435_v34  ;;  %v1356_v34 = vadd.f32 %v2863_v53, %v2833_v52 }
 0x2bb   : > { %1476 = vmatmul.bf16.gmra.mxu3 %v2188_v62  ;;  %v1705_v31 = vadd.f32 %v2918_v37, %v1524_v0 }
 0x2bd   : > { %v1531_v15 = vpop.f32.mrf.mxu1  ;;  %1737 = vst [vmem:[%s2923_s30 + $0x8] sm:$0xff] %v1705_v31  ;;  %v2375_v31 = vld [vmem:[%s2631_s6 + $0x18c] sm:$0xf] }
 0x2be   : > { %v1437_v1 = vpop.f32.mrf.mxu3 }
 0x2bf   : > { %v1438_v3 = vadd.f32 %v1437_v1, %v2843_v17  ;;  %v2237_v1 = vld [vmem:[%s2631_s6 + $0x198] sm:$0xf0] }
 0x2c0   : > { %1570 = vmatmul.bf16.gmra.mxu1 %v2208_v63 }
 0x2c1   : > { %v1527_v45 = vadd.f32 %v1526_v2, %v1438_v3  ;;  %v2221_v2 = vld [vmem:[%s2631_s6 + $0x178] sm:$0xf0]  ;;  %v1370_v3 = vpop.f32.mrf.mxu2 }
 0x2c2   : > { %v2224_v33 = vor.u32 %v2371_v30, %v2221_v2 }
 0x2c3   : > { %v1706_v14 = vadd.f32 %v2918_v37, %v1527_v45 }
 0x2c5   : > { %v1533_v16 = vpop.f32.mrf.mxu1  ;;  %1738 = vst [vmem:[%s2923_s30 + $0x10] sm:$0xff] %v1706_v14  ;;  %v2235_v14 = vld [vmem:[%s2631_s6 + $0x188] sm:$0xf] }
 0x2c6   : > { %v1439_v18 = vpop.f32.mrf.mxu3 }
 0x2c7   : > { %v1440_v51 = vadd.f32 %v1439_v18, %v1351_v10  ;;  %v1361_v18 = vadd.f32 %v2907_v12, %v2845_v22 }
 0x2c9   : > { %v1529_v17 = vadd.f32 %v1528_v40, %v1440_v51  ;;  %v2373_v40 = vld [vmem:[%s2631_s6 + $0x174] sm:$0xf0]  ;;  %v2964_v10 = vpop.f32.mrf.mxu2 }
 0x2ca   : > { %v2220_v63 = vor.u32 %v2373_v40, %v2219_v29 }
 0x2cb   : > { %1481 = vmatmul.bf16.gmra.mxu3 %v2204_v24  ;;  %v1707_v58 = vadd.f32 %v2918_v37, %v1529_v17 }
 0x2cd   : > { %v1536_v55 = vpop.f32.mrf.mxu1  ;;  %1739 = vst [vmem:[%s2923_s30 + $0x18] sm:$0xff] %v1707_v58  ;;  %v2253_v58 = vld [vmem:[%s2631_s6 + $0x1b8] sm:$0xf0] }
 0x2ce   : > { %v1442_v43 = vpop.f32.mrf.mxu3 }
 0x2cf   : > { %v1443_v46 = vadd.f32 %v1442_v43, %v2857_v41  ;;  %v1364_v43 = vadd.f32 %v2933_v9, %v2855_v35 }
 0x2d0   : > { %1575 = vmatmul.bf16.gmra.mxu1 %v2224_v33  ;;  %v2379_v33 = vld [vmem:[%s2631_s6 + $0x1ac] sm:$0xf] }
 0x2d1   : > { %v1532_v49 = vadd.f32 %v1531_v15, %v1443_v46  ;;  %v2240_v15 = vor.u32 %v2375_v31, %v2237_v1  ;;  %v1375_v46 = vpop.f32.mrf.mxu2  ;;  %v2383_v1 = vld [vmem:[%s2631_s6 + $0x1cc] sm:$0xf] }
 0x2d3   : > { %v1708_v62 = vadd.f32 %v2918_v37, %v1532_v49 }
 0x2d5   : > { %v1538_v0 = vpop.f32.mrf.mxu1  ;;  %1740 = vst [vmem:[%s2923_s30 + $0x20] sm:$0xff] %v1708_v62  ;;  %v2381_v62 = vld [vmem:[%s2631_s6 + $0x1b4] sm:$0xf0] }
 0x2d6   : > { %v1444_v19 = vpop.f32.mrf.mxu3 }
 0x2d7   : > { %v1445_v13 = vadd.f32 %v1444_v19, %v1356_v34  ;;  %v2251_v34 = vld [vmem:[%s2631_s6 + $0x1a8] sm:$0xf] }
 0x2d9   : > { %v1534_v41 = vadd.f32 %v1533_v16, %v1445_v13  ;;  %v2377_v16 = vld [vmem:[%s2631_s6 + $0x194] sm:$0xf0] }
 0x2da   : > { %v2236_v2 = vor.u32 %v2377_v16, %v2235_v14  ;;  %v2267_v16 = vld [vmem:[%s2631_s6 + $0x1c8] sm:$0xf] }
 0x2db   : > { %1486 = vmatmul.bf16.gmra.mxu3 %v2220_v63  ;;  %v1709_v45 = vadd.f32 %v2918_v37, %v1534_v41  ;;  %v2252_v63 = vor.u32 %v2381_v62, %v2251_v34  ;;  %v1378_v41 = vpop.f32.mrf.mxu2  ;;  %v1376_v34 = vadd.f32 %v1375_v46, %v2889_v27 }
 0x2dd   : > { %v1541_v52 = vpop.f32.mrf.mxu1  ;;  %1741 = vst [vmem:[%s2923_s30 + $0x28] sm:$0xff] %v1709_v45 }
 0x2de   : > { %v1447_v53 = vpop.f32.mrf.mxu3 }
 0x2df   : > { %v1448_v6 = vadd.f32 %v1447_v53, %v2869_v20 }
 0x2e0   : > { %1580 = vmatmul.bf16.gmra.mxu1 %v2240_v15  ;;  %v2269_v15 = vld [vmem:[%s2631_s6 + $0x1d8] sm:$0xf0] }
 0x2e1   : > { %v1537_v8 = vadd.f32 %v1536_v55, %v1448_v6  ;;  %v2256_v55 = vor.u32 %v2379_v33, %v2253_v58  ;;  %v2272_v45 = vor.u32 %v2383_v1, %v2269_v15  ;;  %v2285_v33 = vld [vmem:[%s2631_s6 + $0x1f8] sm:$0xf0] }
 0x2e3   : > { %v1710_v51 = vadd.f32 %v2918_v37, %v1537_v8  ;;  %v1380_v14 = vpop.f32.mrf.mxu2 }
 0x2e5   : > { %v1543_v24 = vpop.f32.mrf.mxu1  ;;  %1742 = vst [vmem:[%s2923_s30 + $0x30] sm:$0xff] %v1710_v51  ;;  %v1371_v51 = vadd.f32 %v1370_v3, %v2879_v5  ;;  %v1374_v5 = vadd.f32 %v2964_v10, %v2885_v23 }
 0x2e6   : > { %v1449_v17 = vpop.f32.mrf.mxu3 }
 0x2e7   : > { %v1450_v30 = vadd.f32 %v1449_v17, %v1361_v18  ;;  %v2385_v18 = vld [vmem:[%s2631_s6 + $0x1d4] sm:$0xf0] }
 0x2e9   : > { %v1539_v20 = vadd.f32 %v1538_v0, %v1450_v30  ;;  %v1366_v0 = vadd.f32 %v2943_v4, %v2865_v56  ;;  %v1369_v56 = vadd.f32 %v2951_v47, %v2871_v25  ;;  %v2268_v30 = vor.u32 %v2385_v18, %v2267_v16 }
 0x2eb   : > { %1491 = vmatmul.bf16.gmra.mxu3 %v2236_v2  ;;  %v1711_v22 = vadd.f32 %v2918_v37, %v1539_v20  ;;  %v2387_v20 = vld [vmem:[%s2631_s6 + $0x1ec] sm:$0xf]  ;;  %v1383_v58 = vpop.f32.mrf.mxu2 }
 0x2ed   : > { %v1546_v12 = vpop.f32.mrf.mxu1  ;;  %1743 = vst [vmem:[%s2923_s30 + $0x38] sm:$0xff] %v1711_v22 }
 0x2ee   : > { %v1452_v49 = vpop.f32.mrf.mxu3 }
 0x2ef   : > { %v1453_v29 = vadd.f32 %v1452_v49, %v1364_v43 }
 0x2f0   : > { %1585 = vmatmul.bf16.gmra.mxu1 %v2256_v55  ;;  %v2288_v55 = vor.u32 %v2387_v20, %v2285_v33 }
 0x2f1   : > { %v1542_v40 = vadd.f32 %v1541_v52, %v1453_v29  ;;  %v2283_v29 = vld [vmem:[%s2631_s6 + $0x1e8] sm:$0xf] }
 0x2f3   : > { %v1712_v19 = vadd.f32 %v2918_v37, %v1542_v40  ;;  %v2389_v40 = vld [vmem:[%s2631_s6 + $0x1f4] sm:$0xf0] }
 0x2f4   : > { %v2284_v10 = vor.u32 %v2389_v40, %v2283_v29 }
 0x2f5   : > { %v1548_v35 = vpop.f32.mrf.mxu1  ;;  %1744 = vst [vmem:[%s2923_s30 + $0x40] sm:$0xff] %v1712_v19  ;;  %v1385_v19 = vpop.f32.mrf.mxu2 }
 0x2f6   : > { %v1454_v9 = vpop.f32.mrf.mxu3 }
 0x2f7   : > { %v1455_v13 = vadd.f32 %v1454_v9, %v1366_v0 }
 0x2f9   : > { %v1544_v31 = vadd.f32 %v1543_v24, %v1455_v13  ;;  %v1379_v13 = vadd.f32 %v1378_v41, %v2895_v50  ;;  %v1384_v41 = vadd.f32 %v1383_v58, %v2739_v59 }
 0x2fb   : > { %1496 = vmatmul.bf16.gmra.mxu3 %v2252_v63  ;;  %v1713_v4 = vadd.f32 %v2918_v37, %v1544_v31 }
 0x2fd   : > { %v1551_v52 = vpop.f32.mrf.mxu1  ;;  %1745 = vst [vmem:[%s2923_s30 + $0x48] sm:$0xff] %v1713_v4  ;;  %v1388_v46 = vpop.f32.mrf.mxu2 }
 0x2fe   : > { %v1457_v53 = vpop.f32.mrf.mxu3  ;;  %v1389_v59 = vadd.f32 %v1388_v46, %v2753_v28 }
 0x2ff   : > { %v1458_v6 = vadd.f32 %v1457_v53, %v1369_v56 }
 0x300   : > { %1590 = vmatmul.bf16.gmra.mxu1 %v2272_v45  ;;  %v1381_v45 = vadd.f32 %v1380_v14, %v2899_v36  ;;  %v1386_v14 = vadd.f32 %v1385_v19, %v2745_v57 }
 0x301   : > { %v1547_v8 = vadd.f32 %v1546_v12, %v1458_v6 }
 0x303   : > { %v1714_v24 = vadd.f32 %v2918_v37, %v1547_v8 }
 0x305   : > { %v1553_v17 = vpop.f32.mrf.mxu1  ;;  %1746 = vst [vmem:[%s2923_s30 + $0x50] sm:$0xff] %v1714_v24  ;;  %v1390_v50 = vpop.f32.mrf.mxu2 }
 0x306   : > { %v1459_v25 = vpop.f32.mrf.mxu3  ;;  %v1391_v57 = vadd.f32 %v1390_v50, %v2759_v32 }
 0x307   : > { %v1460_v47 = vadd.f32 %v1459_v25, %v1371_v51 }
 0x309   : > { %v1549_v2 = vadd.f32 %v1548_v35, %v1460_v47 }
 0x30b   : > { %1501 = vmatmul.bf16.gmra.mxu3 %v2268_v30  ;;  %v1715_v3 = vadd.f32 %v2918_v37, %v1549_v2 }
 0x30d   : > { %v1556_v43 = vpop.f32.mrf.mxu1  ;;  %1747 = vst [vmem:[%s2923_s30 + $0x58] sm:$0xff] %v1715_v3  ;;  %v1393_v36 = vpop.f32.mrf.mxu2 }
 0x30e   : > { %v1462_v22 = vpop.f32.mrf.mxu3  ;;  %v1394_v40 = vadd.f32 %v1393_v36, %v2767_v39 }
 0x30f   : > { %v1463_v12 = vadd.f32 %v1462_v22, %v1374_v5 }
 0x310   : > { %1595 = vmatmul.bf16.gmra.mxu1 %v2288_v55 }
 0x311   : > { %v1552_v49 = vadd.f32 %v1551_v52, %v1463_v12 }
 0x313   : > { %v1716_v62 = vadd.f32 %v2918_v37, %v1552_v49 }
 0x315   : > { %v1558_v0 = vpop.f32.mrf.mxu1  ;;  %1748 = vst [vmem:[%s2923_s30 + $0x60] sm:$0xff] %v1716_v62  ;;  %v1395_v58 = vpop.f32.mrf.mxu2 }
 0x316   : > { %v1464_v35 = vpop.f32.mrf.mxu3 }
 0x317   : > { %v1465_v23 = vadd.f32 %v1464_v35, %v1376_v34 }
 0x319   : > { %v1554_v9 = vadd.f32 %v1553_v17, %v1465_v23  ;;  %v1396_v23 = vadd.f32 %v1395_v58, %v2771_v44 }
 0x31b   : > { %1506 = vmatmul.bf16.gmra.mxu3 %v2284_v10  ;;  %v1717_v63 = vadd.f32 %v2918_v37, %v1554_v9 }
 0x31d   : > { %v1561_v31 = vpop.f32.mrf.mxu1  ;;  %1749 = vst [vmem:[%s2923_s30 + $0x68] sm:$0xff] %v1717_v63  ;;  %v1398_v29 = vpop.f32.mrf.mxu2 }
 0x31e   : > { %v1467_v1 = vpop.f32.mrf.mxu3 }
 0x31f   : > { %v1468_v27 = vadd.f32 %v1467_v1, %v1379_v13  ;;  %v1399_v1 = vadd.f32 %v1398_v29, %v2775_v54 }
 0x321   : > { %v1557_v15 = vadd.f32 %v1556_v43, %v1468_v27 }
 0x323   : > { %v1718_v56 = vadd.f32 %v2918_v37, %v1557_v15 }
 0x325   : > { %v1563_v4 = vpop.f32.mrf.mxu1  ;;  %1750 = vst [vmem:[%s2923_s30 + $0x70] sm:$0xff] %v1718_v56  ;;  %v1400_v32 = vpop.f32.mrf.mxu2 }
 0x326   : > { %v1469_v52 = vpop.f32.mrf.mxu3  ;;  %v1401_v44 = vadd.f32 %v1400_v32, %v2779_v61 }
 0x327   : > { %v1470_v53 = vadd.f32 %v1469_v52, %v1381_v45 }
 0x329   : > { %v1559_v6 = vadd.f32 %v1558_v0, %v1470_v53 }
 0x32b   : > { %v1719_v8 = vadd.f32 %v2918_v37, %v1559_v6 }
 0x32d   : > { %v1566_v16 = vpop.f32.mrf.mxu1  ;;  %1751 = vst [vmem:[%s2923_s30 + $0x78] sm:$0xff] %v1719_v8  ;;  %v1403_v39 = vpop.f32.mrf.mxu2 }
 0x32e   : > { %v1472_v18 = vpop.f32.mrf.mxu3  ;;  %v1404_v54 = vadd.f32 %v1403_v39, %v2783_v42 }
 0x32f   : > { %v1473_v51 = vadd.f32 %v1472_v18, %v1384_v41 }
 0x331   : > { %v1562_v24 = vadd.f32 %v1561_v31, %v1473_v51 }
 0x333   : > { %v1720_v17 = vadd.f32 %v2918_v37, %v1562_v24 }
 0x335   : > { %v1568_v25 = vpop.f32.mrf.mxu1  ;;  %1752 = vst [vmem:[%s2923_s30 + $0x80] sm:$0xff] %v1720_v17  ;;  %v1405_v52 = vpop.f32.mrf.mxu2 }
 0x336   : > { %v1474_v47 = vpop.f32.mrf.mxu3  ;;  %v1406_v61 = vadd.f32 %v1405_v52, %v2787_v7 }
 0x337   : > { %v1475_v30 = vadd.f32 %v1474_v47, %v1386_v14 }
 0x339   : > { %v1564_v2 = vadd.f32 %v1563_v4, %v1475_v30 }
 0x33b   : > { %v1721_v20 = vadd.f32 %v2918_v37, %v1564_v2 }
 0x33d   : > { %v1571_v33 = vpop.f32.mrf.mxu1  ;;  %1753 = vst [vmem:[%s2923_s30 + $0x88] sm:$0xff] %v1721_v20  ;;  %v1408_v51 = vpop.f32.mrf.mxu2 }
 0x33e   : > { %v1477_v55 = vpop.f32.mrf.mxu3  ;;  %v1409_v42 = vadd.f32 %v1408_v51, %v2791_v21 }
 0x33f   : > { %v1478_v5 = vadd.f32 %v1477_v55, %v1389_v59 }
 0x341   : > { %v1567_v3 = vadd.f32 %v1566_v16, %v1478_v5 }
 0x343   : > { %v1722_v43 = vadd.f32 %v2918_v37, %v1567_v3 }
 0x345   : > { %v1573_v22 = vpop.f32.mrf.mxu1  ;;  %1754 = vst [vmem:[%s2923_s30 + $0x90] sm:$0xff] %v1722_v43  ;;  %v1410_v30 = vpop.f32.mrf.mxu2 }
 0x346   : > { %v1479_v12 = vpop.f32.mrf.mxu3  ;;  %v1411_v55 = vadd.f32 %v1410_v30, %v2795_v11 }
 0x347   : > { %v1480_v49 = vadd.f32 %v1479_v12, %v1391_v57 }
 0x349   : > { %v1569_v28 = vadd.f32 %v1568_v25, %v1480_v49 }
 0x34b   : > { %v1723_v34 = vadd.f32 %v2918_v37, %v1569_v28 }
 0x34d   : > { %v1576_v0 = vpop.f32.mrf.mxu1  ;;  %1755 = vst [vmem:[%s2923_s30 + $0x98] sm:$0xff] %v1723_v34  ;;  %v1413_v7 = vpop.f32.mrf.mxu2 }
 0x34e   : > { %v1482_v62 = vpop.f32.mrf.mxu3  ;;  %v1414_v21 = vadd.f32 %v1413_v7, %v2797_v26 }
 0x34f   : > { %v1483_v19 = vadd.f32 %v1482_v62, %v1394_v40 }
 0x351   : > { %v1572_v35 = vadd.f32 %v1571_v33, %v1483_v19 }
 0x353   : > { %v1724_v10 = vadd.f32 %v2918_v37, %v1572_v35 }
 0x355   : > { %1756 = vst [vmem:[%s2923_s30 + $0xa0] sm:$0xff] %v1724_v10  ;;  %v1578_v63 = vpop.f32.mrf.mxu1  ;;  %v1415_v49 = vpop.f32.mrf.mxu2 }
 0x356   : > { %v1484_v9 = vpop.f32.mrf.mxu3  ;;  %v1416_v11 = vadd.f32 %v1415_v49, %v2803_v38 }
 0x357   : > { %v1485_v13 = vadd.f32 %v1484_v9, %v1396_v23 }
 0x359   : > { %v1574_v31 = vadd.f32 %v1573_v22, %v1485_v13 }
 0x35b   : > { %v1725_v27 = vadd.f32 %v2918_v37, %v1574_v31 }
 0x35d   : > { %1757 = vst [vmem:[%s2923_s30 + $0xa8] sm:$0xff] %v1725_v27  ;;  %v1581_v56 = vpop.f32.mrf.mxu1  ;;  %v1418_v35 = vpop.f32.mrf.mxu2 }
 0x35e   : > { %v1487_v46 = vpop.f32.mrf.mxu3  ;;  %v1419_v26 = vadd.f32 %v1418_v35, %v2810_v48 }
 0x35f   : > { %v1488_v15 = vadd.f32 %v1487_v46, %v1399_v1 }
 0x361   : > { %v1577_v45 = vadd.f32 %v1576_v0, %v1488_v15 }
 0x363   : > { %v1726_v4 = vadd.f32 %v2918_v37, %v1577_v45 }
 0x365   : > { %1758 = vst [vmem:[%s2923_s30 + $0xb0] sm:$0xff] %v1726_v4  ;;  %v1583_v41 = vpop.f32.mrf.mxu1  ;;  %v1420_v31 = vpop.f32.mrf.mxu2 }
 0x366   : > { %v1489_v53 = vpop.f32.mrf.mxu3  ;;  %v1421_v38 = vadd.f32 %v1420_v31, %v2824_v60 }
 0x367   : > { %v1490_v6 = vadd.f32 %v1489_v53, %v1401_v44 }
 0x369   : > { %v1579_v50 = vadd.f32 %v1578_v63, %v1490_v6 }
 0x36b   : > { %v1727_v8 = vadd.f32 %v2918_v37, %v1579_v50 }
 0x36d   : > { %1759 = vst [vmem:[%s2923_s30 + $0xb8] sm:$0xff] %v1727_v8  ;;  %v1586_v17 = vpop.f32.mrf.mxu1 }
 0x36e   : > { %v1492_v16 = vpop.f32.mrf.mxu3 }
 0x36f   : > { %v1493_v18 = vadd.f32 %v1492_v16, %v1404_v54 }
 0x371   : > { %v1582_v24 = vadd.f32 %v1581_v56, %v1493_v18 }
 0x373   : > { %v1728_v36 = vadd.f32 %v2918_v37, %v1582_v24 }
 0x375   : > { %1760 = vst [vmem:[%s2923_s30 + $0xc0] sm:$0xff] %v1728_v36  ;;  %v1588_v33 = vpop.f32.mrf.mxu1 }
 0x376   : > { %v1494_v14 = vpop.f32.mrf.mxu3 }
 0x377   : > { %v1495_v25 = vadd.f32 %v1494_v14, %v1406_v61 }
 0x379   : > { %v1584_v47 = vadd.f32 %v1583_v41, %v1495_v25 }
 0x37b   : > { %v1729_v2 = vadd.f32 %v2918_v37, %v1584_v47 }
 0x37d   : > { %1761 = vst [vmem:[%s2923_s30 + $0xc8] sm:$0xff] %v1729_v2  ;;  %v1591_v22 = vpop.f32.mrf.mxu1 }
 0x37e   : > { %v1497_v59 = vpop.f32.mrf.mxu3 }
 0x37f   : > { %v1498_v20 = vadd.f32 %v1497_v59, %v1409_v42 }
 0x381   : > { %v1587_v58 = vadd.f32 %v1586_v17, %v1498_v20 }
 0x383   : > { %v1730_v5 = vadd.f32 %v2918_v37, %v1587_v58 }
 0x385   : > { %1762 = vst [vmem:[%s2923_s30 + $0xd0] sm:$0xff] %v1730_v5  ;;  %v1593_v34 = vpop.f32.mrf.mxu1 }
 0x386   : > { %v1499_v3 = vpop.f32.mrf.mxu3 }
 0x387   : > { %v1500_v57 = vadd.f32 %v1499_v3, %v1411_v55 }
 0x389   : > { %v1589_v43 = vadd.f32 %v1588_v33, %v1500_v57 }
 0x38b   : > { %v1731_v12 = vadd.f32 %v2918_v37, %v1589_v43 }
 0x38d   : > { %1763 = vst [vmem:[%s2923_s30 + $0xd8] sm:$0xff] %v1731_v12  ;;  %v1596_v9 = vpop.f32.mrf.mxu1 }
 0x38e   : > { %v1502_v29 = vpop.f32.mrf.mxu3 }
 0x38f   : > { %v1503_v28 = vadd.f32 %v1502_v29, %v1414_v21 }
 0x391   : > { %v1592_v40 = vadd.f32 %v1591_v22, %v1503_v28 }
 0x393   : > { %v1732_v62 = vadd.f32 %v2918_v37, %v1592_v40 }
 0x395   : > { %1764 = vst [vmem:[%s2923_s30 + $0xe0] sm:$0xff] %v1732_v62  ;;  %v1598_v46 = vpop.f32.mrf.mxu1 }
 0x396   : > { %v1504_v0 = vpop.f32.mrf.mxu3 }
 0x397   : > { %v1505_v19 = vadd.f32 %v1504_v0, %v1416_v11 }
 0x399   : > { %v1594_v32 = vadd.f32 %v1593_v34, %v1505_v19 }
 0x39b   : > { %v1733_v23 = vadd.f32 %v2918_v37, %v1594_v32 }
 0x39d   : > { %1765 = vst [vmem:[%s2923_s30 + $0xe8] sm:$0xff] %v1733_v23 }
 0x39e   : > { %v1507_v10 = vpop.f32.mrf.mxu3 }
 0x39f   : > { %v1508_v13 = vadd.f32 %v1507_v10, %v1419_v26 }
 0x3a1   : > { %v1597_v63 = vadd.f32 %v1596_v9, %v1508_v13 }
 0x3a3   : > { %v1734_v39 = vadd.f32 %v2918_v37, %v1597_v63 }
 0x3a5   : > { %1766 = vst [vmem:[%s2923_s30 + $0xf0] sm:$0xff] %v1734_v39 }
 0x3a6   : > { %v1509_v1 = vpop.f32.mrf.mxu3 }
 0x3a7   : > { %v1510_v27 = vadd.f32 %v1509_v1, %v1421_v38 }
 0x3a9   : > { %v1599_v15 = vadd.f32 %v1598_v46, %v1510_v27 }
 0x3ab   : > { %v1735_v48 = vadd.f32 %v2918_v37, %v1599_v15 }
 0x3ad   : > { %1767 = vst [vmem:[%s2923_s30 + $0xf8] sm:$0xff] %v1735_v48 }
 0x3ae PF: > { %s14_s17 = sadd.s32 1, %s2448_s17   ;;  %s3076_s15 = smov %s2444_s16 }
 0x3af   : > { %p11_p5 = scmp.ge.s32.totalorder %s14_s17, 4   ;;  %s3077_s16 = smov %s3079_s18 }
 0x3b1   :  { %13 = sbr.rel (!%p11_p5) target bundleno = 2 (0x2), region = 77 }

</bundles_post_ra>
